<compile_context>
chip_gen: v7x
topology: tpu7x:2x2x1
jax: 0.10.0
libtpu: 0.0.40
codegen_flags: <defaults>
</compile_context>

<pallas_src>
import math

import jax
import jax.numpy as jnp
from jax.experimental import pallas as pl
from jax.experimental.pallas import tpu as pltpu


TILE_B = 1024          # f32 x double-buffer ~6.3 MiB: safe on v5e/v6e/v7x
H1_PAD = 128           # 85 -> 128
H2_PAD = 128           # 30 -> 128


def _mlp_softmax_kernel(x_ref, w1_ref, b1_ref, w2_ref, b2_ref, w3_ref, b3_ref,
                        o_ref):
    # x streamed in f32; cast to bf16 in VMEM right before the MXU so the
    # first matmul is a guaranteed single-pass bf16 x bf16 -> f32.
    x = x_ref[...].astype(jnp.bfloat16)                      # (TB, 784)

    # Linear 784 -> 128(pad of 85), ReLU.
    h1 = jnp.dot(x, w1_ref[...], preferred_element_type=jnp.float32)
    h1 = jnp.maximum(h1 + b1_ref[...], 0.0)                  # (TB, 128) f32

    # Linear 128 -> 128(pad of 30), ReLU.  Explicit bf16 operands for the MXU.
    h2 = jnp.dot(h1.astype(jnp.bfloat16), w2_ref[...],
                 preferred_element_type=jnp.float32)
    h2 = jnp.maximum(h2 + b2_ref[...], 0.0)                  # (TB, 128) f32

    # Linear 128 -> n.
    logits = jnp.dot(h2.astype(jnp.bfloat16), w3_ref[...],
                     preferred_element_type=jnp.float32)
    logits = logits + b3_ref[...]                            # (TB, n) f32

    # Numerically stable softmax with an exact divide (rows sum to 1 to f32
    # rounding; the kernel is DMA-bound so this costs nothing on the wall).
    m = jnp.max(logits, axis=-1, keepdims=True)
    e = jnp.exp(logits - m)
    s = jnp.sum(e, axis=-1, keepdims=True)
    o_ref[...] = e / s


def _round_up(x, m):
    return ((x + m - 1) // m) * m


def _pick_tile(B, tile_b):
    """Tile rows: <= tile_b, multiple of 8 (sublane), and >=2 grid steps when
    B > 8 so v7x's two TensorCores both get work via dimension_semantics."""
    if B <= 8:
        return B
    half = _round_up(pl.cdiv(B, 2), 8)
    tb = min(tile_b, half)
    if tb >= B:
        return B
    return tb


def _run_mlp(x2d, params, n, *, tile_b=TILE_B):
    """x2d: (B, 784) float32.  params: dict of (padded) weights/biases."""
    B = x2d.shape[0]
    tb = _pick_tile(B, tile_b)
    grid = (pl.cdiv(B, tb),)

    w1, b1 = params["w1"], params["b1"]
    w2, b2 = params["w2"], params["b2"]
    w3, b3 = params["w3"], params["b3"]

    def const_spec(arr):                 # grid-invariant, VMEM-resident
        return pl.BlockSpec(arr.shape, lambda i: (0, 0))

    weight_bytes = sum(a.size * a.dtype.itemsize
                       for a in (w1, b1, w2, b2, w3, b3))
    cost = pl.CostEstimate(
        flops=2 * B * (784 * H1_PAD + H1_PAD * H2_PAD + H2_PAD * n),
        transcendentals=B * n,
        bytes_accessed=x2d.size * x2d.dtype.itemsize + B * n * 4 + weight_bytes,
    )

    return pl.pallas_call(
        _mlp_softmax_kernel,
        out_shape=jax.ShapeDtypeStruct((B, n), jnp.float32),
        grid=grid,
        in_specs=[
            pl.BlockSpec((tb, 784), lambda i: (i, 0)),       # streamed x tiles
            const_spec(w1), const_spec(b1),
            const_spec(w2), const_spec(b2),
            const_spec(w3), const_spec(b3),
        ],
        out_specs=pl.BlockSpec((tb, n), lambda i: (i, 0)),
        compiler_params=pltpu.CompilerParams(
            dimension_semantics=("parallel",),               # megacore on v7x
        ),
        cost_estimate=cost,
    )(x2d, w1, b1, w2, b2, w3, b3)


class MNISTEncoderLargePallas:
    """Pallas re-implementation of MNISTEncoderLarge's forward pass."""

    def __init__(self, n, key):
        self.n = n
        params = {}

        # Layer 1: 784 -> 85, padded to 784 -> 128, weight stored bf16.
        key, kw, kb = jax.random.split(key, 3)
        bound = 1.0 / math.sqrt(784.0)                   # PyTorch Linear init
        w1 = jax.random.uniform(kw, (784, 85), jnp.float32, -bound, bound)
        b1 = jax.random.uniform(kb, (1, 85), jnp.float32, -bound, bound)
        params["w1"] = jnp.pad(w1, ((0, 0), (0, H1_PAD - 85))).astype(jnp.bfloat16)
        params["b1"] = jnp.pad(b1, ((0, 0), (0, H1_PAD - 85)))

        # Layer 2: 85 -> 30, padded to 128 -> 128 (zero rows/cols), bf16.
        key, kw, kb = jax.random.split(key, 3)
        bound = 1.0 / math.sqrt(85.0)
        w2 = jax.random.uniform(kw, (85, 30), jnp.float32, -bound, bound)
        b2 = jax.random.uniform(kb, (1, 30), jnp.float32, -bound, bound)
        params["w2"] = jnp.pad(
            w2, ((0, H1_PAD - 85), (0, H2_PAD - 30))).astype(jnp.bfloat16)
        params["b2"] = jnp.pad(b2, ((0, 0), (0, H2_PAD - 30)))

        # Layer 3: 30 -> n, padded to 128 -> n (zero rows), bf16; output n-wide.
        key, kw, kb = jax.random.split(key, 3)
        bound = 1.0 / math.sqrt(30.0)
        w3 = jax.random.uniform(kw, (30, n), jnp.float32, -bound, bound)
        b3 = jax.random.uniform(kb, (1, n), jnp.float32, -bound, bound)
        params["w3"] = jnp.pad(w3, ((0, H2_PAD - 30), (0, 0))).astype(jnp.bfloat16)
        params["b3"] = b3

        self.params = params

    def __call__(self, x):
        original_shape = x.shape
        n_dims = len(original_shape)
        x2d = x.reshape(-1, 784)                         # stays f32, no HBM copy
        o = _run_mlp(x2d, self.params, self.n)
        return o.reshape(*original_shape[0:n_dims - 3], self.n)


def _reference_forward(x, params, n):
    """Pure-JAX reference with matching numerics (bf16 matmul operands)."""
    original_shape = x.shape
    xb = x.reshape(-1, 784).astype(jnp.bfloat16)
    h1 = jnp.dot(xb, params["w1"], preferred_element_type=jnp.float32)
    h1 = jnp.maximum(h1 + params["b1"], 0.0)
    h2 = jnp.dot(h1.astype(jnp.bfloat16), params["w2"],
                 preferred_element_type=jnp.float32)
    h2 = jnp.maximum(h2 + params["b2"], 0.0)
    logits = jnp.dot(h2.astype(jnp.bfloat16), params["w3"],
                     preferred_element_type=jnp.float32) + params["b3"]
    o = jax.nn.softmax(logits, axis=-1)
    return o.reshape(*original_shape[:-3], n)


if __name__ == "__main__":
    key = jax.random.PRNGKey(0)
    k_model, k_x1, k_x2 = jax.random.split(key, 3)

    n_classes = 10
    model = MNISTEncoderLargePallas(n_classes, k_model)

    # MNIST-like input: leading batch dims (2, 4), trailing (1, 28, 28) = 784.
    x = jax.random.uniform(k_x1, (2, 4, 1, 28, 28), jnp.float32)
    out = jax.block_until_ready(model(x))
    assert out.shape == (2, 4, n_classes), out.shape

    ref = _reference_forward(x, model.params, n_classes)
    assert jnp.allclose(out, ref, atol=2e-3, rtol=2e-3), "mismatch vs reference"
    # Exact divide in the softmax -> rows sum to 1 up to f32 rounding.
    assert jnp.allclose(jnp.sum(out, axis=-1), 1.0, atol=1e-3)

    # Exercise the multi-tile pipelined path (partial last tile): B=200, tb=64.
    xb = jax.random.uniform(k_x2, (200, 1, 28, 28), jnp.float32)
    out2 = jax.block_until_ready(
        _run_mlp(xb.reshape(-1, 784), model.params, n_classes, tile_b=64))
    ref2 = _reference_forward(xb, model.params, n_classes)
    assert out2.shape == (200, n_classes), out2.shape
    assert jnp.allclose(out2, ref2, atol=2e-3, rtol=2e-3), "multi-tile mismatch"
    assert jnp.allclose(jnp.sum(out2, axis=-1), 1.0, atol=1e-3)

    print("KERNEL_OK")
</pallas_src>

<mosaic_0001>
module attributes {stable_mosaic.version = 11 : i64} {
  func.func @_mlp_softmax_kernel(%arg0: i32, %arg1: memref<8x784xf32, #tpu.memory_space<vmem>>, %arg2: memref<784x128xbf16, #tpu.memory_space<vmem>>, %arg3: memref<1x128xf32, #tpu.memory_space<vmem>>, %arg4: memref<128x128xbf16, #tpu.memory_space<vmem>>, %arg5: memref<1x128xf32, #tpu.memory_space<vmem>>, %arg6: memref<128x10xbf16, #tpu.memory_space<vmem>>, %arg7: memref<1x10xf32, #tpu.memory_space<vmem>>, %arg8: memref<8x10xf32, #tpu.memory_space<vmem>>) attributes {dimension_semantics = [#tpu.dimension_semantics<parallel>], iteration_bounds = array<i64: 1>, scalar_prefetch = 0 : i64, scratch_operands = 0 : i64, tpu.core_type = #tpu.core_type<tc>, window_params = [{transform_indices = @transform_0, window_bounds = array<i64: 8, 784>}, {pipeline_mode = #tpu.pipeline_mode<synchronous>, transform_indices = @transform_1, window_bounds = array<i64: 784, 128>}, {pipeline_mode = #tpu.pipeline_mode<synchronous>, transform_indices = @transform_2, window_bounds = array<i64: 1, 128>}, {pipeline_mode = #tpu.pipeline_mode<synchronous>, transform_indices = @transform_3, window_bounds = array<i64: 128, 128>}, {pipeline_mode = #tpu.pipeline_mode<synchronous>, transform_indices = @transform_4, window_bounds = array<i64: 1, 128>}, {pipeline_mode = #tpu.pipeline_mode<synchronous>, transform_indices = @transform_5, window_bounds = array<i64: 128, 10>}, {pipeline_mode = #tpu.pipeline_mode<synchronous>, transform_indices = @transform_6, window_bounds = array<i64: 1, 10>}, {transform_indices = @transform_7, window_bounds = array<i64: 8, 10>}]} {
    %c0 = arith.constant 0 : index
    %c0_0 = arith.constant 0 : index
    %0 = vector.load %arg1[%c0, %c0_0] : memref<8x784xf32, #tpu.memory_space<vmem>>, vector<8x784xf32>
    %1 = arith.truncf %0 : vector<8x784xf32> to vector<8x784xbf16>
    %c0_1 = arith.constant 0 : index
    %c0_2 = arith.constant 0 : index
    %2 = vector.load %arg2[%c0_1, %c0_2] : memref<784x128xbf16, #tpu.memory_space<vmem>>, vector<784x128xbf16>
    %cst = arith.constant dense<0.000000e+00> : vector<8x128xf32>
    %3 = tpu.matmul %1, %2, %cst {dimension_numbers = #tpu.dot_dimension_numbers<[1], [0], [0], [1], [0, 0, 1, 1], [], []>} : vector<8x784xbf16>, vector<784x128xbf16>, vector<8x128xf32> -> vector<8x128xf32>
    %c0_3 = arith.constant 0 : index
    %c0_4 = arith.constant 0 : index
    %4 = vector.load %arg3[%c0_3, %c0_4] : memref<1x128xf32, #tpu.memory_space<vmem>>, vector<1x128xf32>
    %5 = vector.broadcast %4 : vector<1x128xf32> to vector<8x128xf32>
    %6 = arith.addf %3, %5 : vector<8x128xf32>
    %cst_5 = arith.constant 0.000000e+00 : f32
    %7 = vector.broadcast %cst_5 : f32 to vector<8x128xf32>
    %8 = arith.maximumf %6, %7 : vector<8x128xf32>
    %9 = arith.truncf %8 : vector<8x128xf32> to vector<8x128xbf16>
    %c0_6 = arith.constant 0 : index
    %c0_7 = arith.constant 0 : index
    %10 = vector.load %arg4[%c0_6, %c0_7] : memref<128x128xbf16, #tpu.memory_space<vmem>>, vector<128x128xbf16>
    %cst_8 = arith.constant dense<0.000000e+00> : vector<8x128xf32>
    %11 = tpu.matmul %9, %10, %cst_8 {dimension_numbers = #tpu.dot_dimension_numbers<[1], [0], [0], [1], [0, 0, 1, 1], [], []>} : vector<8x128xbf16>, vector<128x128xbf16>, vector<8x128xf32> -> vector<8x128xf32>
    %c0_9 = arith.constant 0 : index
    %c0_10 = arith.constant 0 : index
    %12 = vector.load %arg5[%c0_9, %c0_10] : memref<1x128xf32, #tpu.memory_space<vmem>>, vector<1x128xf32>
    %13 = vector.broadcast %12 : vector<1x128xf32> to vector<8x128xf32>
    %14 = arith.addf %11, %13 : vector<8x128xf32>
    %cst_11 = arith.constant 0.000000e+00 : f32
    %15 = vector.broadcast %cst_11 : f32 to vector<8x128xf32>
    %16 = arith.maximumf %14, %15 : vector<8x128xf32>
    %17 = arith.truncf %16 : vector<8x128xf32> to vector<8x128xbf16>
    %c0_12 = arith.constant 0 : index
    %c0_13 = arith.constant 0 : index
    %18 = vector.load %arg6[%c0_12, %c0_13] : memref<128x10xbf16, #tpu.memory_space<vmem>>, vector<128x10xbf16>
    %cst_14 = arith.constant dense<0.000000e+00> : vector<8x10xf32>
    %19 = tpu.matmul %17, %18, %cst_14 {dimension_numbers = #tpu.dot_dimension_numbers<[1], [0], [0], [1], [0, 0, 1, 1], [], []>} : vector<8x128xbf16>, vector<128x10xbf16>, vector<8x10xf32> -> vector<8x10xf32>
    %c0_15 = arith.constant 0 : index
    %c0_16 = arith.constant 0 : index
    %20 = vector.load %arg7[%c0_15, %c0_16] : memref<1x10xf32, #tpu.memory_space<vmem>>, vector<1x10xf32>
    %21 = vector.broadcast %20 : vector<1x10xf32> to vector<8x10xf32>
    %22 = arith.addf %19, %21 : vector<8x10xf32>
    %cst_17 = arith.constant dense<0xFF800000> : vector<8xf32>
    %23 = vector.multi_reduction <maximumf>, %22, %cst_17 [1] : vector<8x10xf32> to vector<8xf32>
    %24 = vector.shape_cast %23 : vector<8xf32> to vector<8x1xf32>
    %25 = vector.broadcast %24 : vector<8x1xf32> to vector<8x10xf32>
    %26 = arith.subf %22, %25 : vector<8x10xf32>
    %27 = math.exp %26 : vector<8x10xf32>
    %cst_18 = arith.constant dense<0.000000e+00> : vector<8xf32>
    %28 = vector.multi_reduction <add>, %27, %cst_18 [1] : vector<8x10xf32> to vector<8xf32>
    %29 = vector.shape_cast %28 : vector<8xf32> to vector<8x1xf32>
    %30 = vector.broadcast %29 : vector<8x1xf32> to vector<8x10xf32>
    %31 = arith.divf %27, %30 : vector<8x10xf32>
    %c0_19 = arith.constant 0 : index
    %c0_20 = arith.constant 0 : index
    %32 = vector.load %arg8[%c0_19, %c0_20] : memref<8x10xf32, #tpu.memory_space<vmem>>, vector<8x10xf32>
    tpu.vector_store %arg8[%c0_19, %c0_20], %31 {strides = array<i32>} : memref<8x10xf32, #tpu.memory_space<vmem>>, vector<8x10xf32>,
    return
  }
  func.func @transform_0(%arg0: i32) -> (i32, i32) {
    %c0_i32 = arith.constant 0 : i32
    %c0_i32_0 = arith.constant 0 : i32
    return %arg0, %c0_i32 : i32, i32
  }
  func.func @transform_1(%arg0: i32) -> (i32, i32) {
    %c0_i32 = arith.constant 0 : i32
    %c0_i32_0 = arith.constant 0 : i32
    %c0_i32_1 = arith.constant 0 : i32
    return %c0_i32, %c0_i32_0 : i32, i32
  }
  func.func @transform_2(%arg0: i32) -> (i32, i32) {
    %c0_i32 = arith.constant 0 : i32
    %c0_i32_0 = arith.constant 0 : i32
    %c0_i32_1 = arith.constant 0 : i32
    return %c0_i32, %c0_i32_0 : i32, i32
  }
  func.func @transform_3(%arg0: i32) -> (i32, i32) {
    %c0_i32 = arith.constant 0 : i32
    %c0_i32_0 = arith.constant 0 : i32
    %c0_i32_1 = arith.constant 0 : i32
    return %c0_i32, %c0_i32_0 : i32, i32
  }
  func.func @transform_4(%arg0: i32) -> (i32, i32) {
    %c0_i32 = arith.constant 0 : i32
    %c0_i32_0 = arith.constant 0 : i32
    %c0_i32_1 = arith.constant 0 : i32
    return %c0_i32, %c0_i32_0 : i32, i32
  }
  func.func @transform_5(%arg0: i32) -> (i32, i32) {
    %c0_i32 = arith.constant 0 : i32
    %c0_i32_0 = arith.constant 0 : i32
    %c0_i32_1 = arith.constant 0 : i32
    return %c0_i32, %c0_i32_0 : i32, i32
  }
  func.func @transform_6(%arg0: i32) -> (i32, i32) {
    %c0_i32 = arith.constant 0 : i32
    %c0_i32_0 = arith.constant 0 : i32
    %c0_i32_1 = arith.constant 0 : i32
    return %c0_i32, %c0_i32_0 : i32, i32
  }
  func.func @transform_7(%arg0: i32) -> (i32, i32) {
    %c0_i32 = arith.constant 0 : i32
    %c0_i32_0 = arith.constant 0 : i32
    return %arg0, %c0_i32 : i32, i32
  }
}

</mosaic_0001>

<bundles_post_ra>
// kernel: tpu_custom_call.1
= control target key start
LH: loop header
LB: loop body
LE: loop exit
PB: predicated region body
PF: predicated region fallthrough
CT: control target
= control target key end

     0   :  { %12 = vsyncpa [#allocation3], 0  ;;  %s1408_s0 = inlined_call_operand.hbm [shape: f32[8,784], index: 0, kind: input, shape index: {}]   ;;  %s1409_s1 = inlined_call_operand.hbm [shape: bf16[784,128], index: 1, kind: input, shape index: {}]   ;;  %s1410_s2 = inlined_call_operand.vmem [shape: f32[1,128], index: 2, kind: input, shape index: {}]   ;;  %s1411_s3 = inlined_call_operand.vmem [shape: bf16[128,128], index: 3, kind: input, shape index: {}]   ;;  %s1412_s4 = inlined_call_operand.vmem [shape: f32[1,128], index: 4, kind: input, shape index: {}]   ;;  %s1413_s5 = inlined_call_operand.vmem [shape: bf16[128,10], index: 5, kind: input, shape index: {}]   ;;  %s1414_s6 = inlined_call_operand.vmem [shape: f32[1,10], index: 6, kind: input, shape index: {}]   ;;  %s1415_s7 = inlined_call_operand.hbm [shape: f32[8,10], index: 7, kind: output, shape index: {}]  }
   0x1   :  { %13 = vsyncpa [#allocation6], 0 }
   0x2   :  { %14 = vsyncpa [#allocation4], 0  ;;  %s1235_s24 = smov [#allocation2]   ;;  %s1236_s26 = smov [#allocation5]  }
   0x3   :  { %s21_s25 = sshll.u32 %s1235_s24, 4  ;;  %s30_s27 = sshll.u32 %s1236_s26, 4  ;;  %s22_s25 = int_to_ptr.vmem [resolvable:$true] %s21_s25  ;;  %s1282_s27 = int_to_ptr.vmem [resolvable:$true] %s30_s27 }
   0x4   :  { %s1163_s30 = scalar_lea.hbm %s1408_s0, 896 }
   0x5   :  { %p1164_p0 = scmp.ne.s32.totalorder %s1408_s0, %s1163_s30  ;;  %p1167_p1 = scmp.lt.u32.totalorder %s1163_s30, %s1408_s0 }
   0x7   :  { %p1169_p2 = pnand %p1167_p1, %p1164_p0 }
   0x9   :  { %1172 = shalt.err (!%p1169_p2)
}
   0xa   :  { %s1173_s12 = scalar_lea.vmem %s22_s25, 896  ;;  %p1178_p4 = scmp.lt.s32.totalorder %s22_s25, %s22_s25 }
   0xb   :  { %p1174_p3 = scmp.ne.s32.totalorder %s22_s25, %s1173_s12  ;;  %p1179_p5 = scmp.lt.s32.totalorder %s1173_s12, %s1173_s12 }
   0xd   :  { %p1180_p6 = por %p1179_p5, %p1178_p4 }
   0xf   :  { %p1181_p7 = pnand %p1180_p6, %p1174_p3 }
  0x11   :  { %1184 = shalt.err (!%p1181_p7)
}
  0x12   :  { %24 = dma.hbm_to_vmem [thread:$0]  %s1408_s0, 896, %s22_s25, [#allocation3]  }
  0x13   :  { %s1185_s17 = scalar_lea.hbm %s1409_s1, 6272 }
  0x14   :  { %p1186_p8 = scmp.ne.s32.totalorder %s1409_s1, %s1185_s17  ;;  %p1189_p9 = scmp.lt.u32.totalorder %s1185_s17, %s1409_s1 }
  0x16   :  { %p1191_p10 = pnand %p1189_p9, %p1186_p8 }
  0x18   :  { %1194 = shalt.err (!%p1191_p10)
}
  0x19   :  { %s1195_s22 = scalar_lea.vmem %s1282_s27, 6272  ;;  %p1200_p12 = scmp.lt.s32.totalorder %s1282_s27, %s1282_s27 }
  0x1a   :  { %p1196_p11 = scmp.ne.s32.totalorder %s1282_s27, %s1195_s22  ;;  %p1201_p13 = scmp.lt.s32.totalorder %s1195_s22, %s1195_s22 }
  0x1c   :  { %p1202_p0 = por %p1201_p13, %p1200_p12 }
  0x1e   :  { %p1203_p1 = pnand %p1202_p0, %p1196_p11 }
  0x20   :  { %1206 = shalt.err (!%p1203_p1)
}
  0x21   :  { %s1237_s0 = smov 64   ;;  %s1238_s23 = smov 4  }
  0x22   :  { %36 = dma.hbm_to_vmem [thread:$0]  %s1409_s1, 6272, %s1282_s27, [#allocation6], %s1237_s0, %s1237_s0, %s1238_s23  }
  0x23   :  { %1229 = dma.done.wait [#allocation3], 896  }
  0x24   :  { %1230 = vsyncadd [#allocation3], 4294966400 }
  0x25   :  { %1231 = dma.done.wait [#allocation6], 6272  }
  0x26   :  { %1232 = vsyncadd [#allocation6], 4294961024  ;;  %v1094_v0 = vld [vmem:[#allocation5 + $0x40] sm:$0xff]   ;;  %v1098_v4 = vld [vmem:[#allocation5 + $0x48] sm:$0xff]   ;;  %v1239_v44 = vmov 0.0   ;;  %vm1240_vm0 = vmmov 0  }
  0x27   :  { %v1095_v1 = vld [vmem:[#allocation5] sm:$0xff]   ;;  %955 = vmatprep.subr.bf16.mxu0 %v1094_v0  ;;  %v1099_v5 = vld [vmem:[#allocation5 + $0x8] sm:$0xff]   ;;  %v1102_v8 = vld [vmem:[#allocation5 + $0x50] sm:$0xff]   ;;  %vm467_vm1 = vcmask 130048   ;;  %vm857_vm2 = vcmask 80896  }
  0x28   :  { %v1096_v2 = vld [vmem:[#allocation5 + $0xc0] sm:$0xff]   ;;  %956 = vmatpush3.bf16.msra.mxu0 %v1095_v1  ;;  %v1100_v6 = vld [vmem:[#allocation5 + $0xc8] sm:$0xff]   ;;  %v1103_v9 = vld [vmem:[#allocation5 + $0x10] sm:$0xff]  }
  0x29   :  { %v1097_v3 = vld [vmem:[#allocation5 + $0x80] sm:$0xff]   ;;  %977 = vmatprep.subr.bf16.mxu1 %v1096_v2  ;;  %957 = vmatprep.subr.bf16.mxu0 %v1098_v4  ;;  %v1101_v7 = vld [vmem:[#allocation5 + $0x88] sm:$0xff]   ;;  %v1104_v10 = vld [vmem:[#allocation5 + $0xd0] sm:$0xff]  }
  0x2a   :  { %978 = vmatpush3.bf16.msra.mxu1 %v1097_v3  ;;  %v1105_v11 = vld [vmem:[#allocation5 + $0x90] sm:$0xff]   ;;  %v1106_v12 = vld [vmem:[#allocation5 + $0x58] sm:$0xff]   ;;  %v1110_v16 = vld [vmem:[#allocation5 + $0x60] sm:$0xff]  }
  0x2b   :  { %979 = vmatprep.subr.bf16.mxu1 %v1100_v6  ;;  %v1107_v13 = vld [vmem:[#allocation5 + $0x18] sm:$0xff]   ;;  %v1111_v17 = vld [vmem:[#allocation5 + $0x20] sm:$0xff]   ;;  %v1114_v20 = vld [vmem:[#allocation5 + $0x68] sm:$0xff]  }
  0x2c   :  { %958 = vmatpush3.bf16.msra.mxu0 %v1099_v5  ;;  %v1108_v14 = vld [vmem:[#allocation5 + $0xd8] sm:$0xff]   ;;  %v1112_v18 = vld [vmem:[#allocation5 + $0xe0] sm:$0xff]   ;;  %v1115_v21 = vld [vmem:[#allocation5 + $0x28] sm:$0xff]  }
  0x2d   :  { %959 = vmatprep.subr.bf16.mxu0 %v1102_v8  ;;  %v1109_v15 = vld [vmem:[#allocation5 + $0x98] sm:$0xff]   ;;  %v1113_v19 = vld [vmem:[#allocation5 + $0xa0] sm:$0xff]   ;;  %v1116_v22 = vld [vmem:[#allocation5 + $0xe8] sm:$0xff]  }
  0x2e   :  { %980 = vmatpush3.bf16.msra.mxu1 %v1101_v7  ;;  %v1117_v23 = vld [vmem:[#allocation5 + $0xa8] sm:$0xff]   ;;  %v1118_v24 = vld [vmem:[#allocation5 + $0x70] sm:$0xff]   ;;  %v1122_v28 = vld [vmem:[#allocation5 + $0x78] sm:$0xff]  }
  0x2f   :  { %981 = vmatprep.subr.bf16.mxu1 %v1104_v10  ;;  %v1119_v25 = vld [vmem:[#allocation5 + $0x30] sm:$0xff]   ;;  %v1123_v29 = vld [vmem:[#allocation5 + $0x38] sm:$0xff]   ;;  %v54_v34 = vld [vmem:[#allocation2] sm:$0xff] }
  0x30   :  { %960 = vmatpush3.bf16.msra.mxu0 %v1103_v9  ;;  %v1120_v26 = vld [vmem:[#allocation5 + $0xf0] sm:$0xff]   ;;  %v1124_v30 = vld [vmem:[#allocation5 + $0xf8] sm:$0xff]   ;;  %v61_v35 = vpack.c.bf16 %v54_v34, %v54_v34  ;;  %v1126_v36 = vld [vmem:[#allocation5 + $0x140] sm:$0xff]  }
  0x31   :  { %961 = vmatprep.subr.bf16.mxu0 %v1106_v12  ;;  %v1121_v27 = vld [vmem:[#allocation5 + $0xb0] sm:$0xff]   ;;  %v1125_v33 = vld [vmem:[#allocation5 + $0xb8] sm:$0xff]   ;;  %v57_v37 = vld [vmem:[#allocation2 + $0x18] sm:$0xff] }
  0x32   :  { %982 = vmatpush3.bf16.msra.mxu1 %v1105_v11  ;;  %v55_v31 = vld [vmem:[#allocation2 + $0x8] sm:$0xff]  ;;  %v64_v38 = vpack.c.bf16 %v57_v37, %v57_v37  ;;  %v1127_v39 = vld [vmem:[#allocation5 + $0x100] sm:$0xff]   ;;  %v56_v40 = vld [vmem:[#allocation2 + $0x10] sm:$0xff] }
  0x33   :  { %983 = vmatprep.subr.bf16.mxu1 %v1108_v14  ;;  %v62_v32 = vpack.c.bf16 %v55_v31, %v55_v31  ;;  %v63_v41 = vpack.c.bf16 %v56_v40, %v56_v40  ;;  %v1128_v42 = vld [vmem:[#allocation5 + $0x148] sm:$0xff]   ;;  %v1130_v45 = vld [vmem:[#allocation5 + $0x150] sm:$0xff]   ;;  %v1132_v47 = vld [vmem:[#allocation5 + $0x158] sm:$0xff]  }
  0x34   :  { %962 = vmatpush3.bf16.msra.mxu0 %v1107_v13  ;;  %543 = vmatprep.mubr.bf16.mxu1 %v64_v38  ;;  %v1129_v43 = vld [vmem:[#allocation5 + $0x108] sm:$0xff]   ;;  %v1131_v46 = vld [vmem:[#allocation5 + $0x110] sm:$0xff]   ;;  %v1133_v48 = vld [vmem:[#allocation5 + $0x118] sm:$0xff]  }
  0x35   :  { %963 = vmatprep.subr.bf16.mxu0 %v1110_v16  ;;  %503 = vmatprep.mubr.bf16.mxu0 %v62_v32  ;;  %v1134_v49 = vld [vmem:[#allocation5 + $0x160] sm:$0xff]   ;;  %v1136_v51 = vld [vmem:[#allocation5 + $0x168] sm:$0xff]   ;;  %v59_v54 = vld [vmem:[#allocation2 + $0x28] sm:$0xff] }
  0x36   :  { %984 = vmatpush3.bf16.msra.mxu1 %v1109_v15  ;;  %v1135_v50 = vld [vmem:[#allocation5 + $0x120] sm:$0xff]   ;;  %v1137_v52 = vld [vmem:[#allocation5 + $0x128] sm:$0xff]   ;;  %v1138_v55 = vld [vmem:[#allocation5 + $0x170] sm:$0xff]   ;;  %v66_v56 = vpack.c.bf16 %v59_v54, %v59_v54 }
  0x37   :  { %985 = vmatprep.subr.bf16.mxu1 %v1112_v18  ;;  %v1142_v53 = vld [vmem:[#allocation5 + $0x180] sm:$0xff]   ;;  %v60_v57 = vld [vmem:[#allocation2 + $0x30] sm:$0xff]  ;;  %v1139_v59 = vld [vmem:[#allocation5 + $0x130] sm:$0xff]  }
  0x38   :  { %964 = vmatpush3.bf16.msra.mxu0 %v1111_v17  ;;  %v67_v58 = vpack.c.bf16 %v60_v57, %v60_v57  ;;  %v1140_v60 = vld [vmem:[#allocation5 + $0x178] sm:$0xff]   ;;  %v58_v62 = vld [vmem:[#allocation2 + $0x20] sm:$0xff]  ;;  %v1144_v1 = vld [vmem:[%s1411_s3 + $0x8] sm:$0xff]  }
  0x39   :  { %965 = vmatprep.subr.bf16.mxu0 %v1114_v20  ;;  %v1141_v61 = vld [vmem:[#allocation5 + $0x138] sm:$0xff]   ;;  %v65_v63 = vpack.c.bf16 %v58_v62, %v58_v62  ;;  %v1143_v0 = vld [vmem:[%s1411_s3] sm:$0xff]   ;;  %v1146_v3 = vld [vmem:[%s1411_s3 + $0x18] sm:$0xff]  }
  0x3a   :  { %986 = vmatpush3.bf16.msra.mxu1 %v1113_v19  ;;  %v1145_v2 = vld [vmem:[%s1411_s3 + $0x10] sm:$0xff]   ;;  %v1147_v4 = vld [vmem:[%s1411_s3 + $0x20] sm:$0xff]   ;;  %v1148_v5 = vld [vmem:[%s1411_s3 + $0x28] sm:$0xff]  }
  0x3b   :  { %987 = vmatprep.subr.bf16.mxu1 %v1116_v22  ;;  %v1149_v6 = vld [vmem:[%s1411_s3 + $0x30] sm:$0xff]   ;;  %v1150_v7 = vld [vmem:[%s1411_s3 + $0x38] sm:$0xff]   ;;  %v1151_v8 = vld [vmem:[%s1413_s5] sm:$0xff]  }
  0x3c   :  { %966 = vmatpush3.bf16.msra.mxu0 %v1115_v21  ;;  %v1152_v9 = vld [vmem:[%s1413_s5 + $0x8] sm:$0xff]   ;;  %v1153_v10 = vld [vmem:[%s1413_s5 + $0x10] sm:$0xff]   ;;  %v1154_v11 = vld [vmem:[%s1413_s5 + $0x18] sm:$0xff]  }
  0x3d   :  { %967 = vmatprep.subr.bf16.mxu0 %v1118_v24  ;;  %v1155_v12 = vld [vmem:[%s1413_s5 + $0x20] sm:$0xff]   ;;  %v1156_v13 = vld [vmem:[%s1413_s5 + $0x28] sm:$0xff]   ;;  %v1157_v40 = vld [vmem:[%s1413_s5 + $0x30] sm:$0xff]  }
  0x3e   :  { %988 = vmatpush3.bf16.msra.mxu1 %v1117_v23  ;;  %v886_v15 = vld [vmem:[%s1410_s2] ss:$0 sm:$0xff] }
  0x3f   :  { %989 = vmatprep.subr.bf16.mxu1 %v1120_v26 }
  0x40   :  { %968 = vmatpush3.bf16.msra.mxu0 %v1119_v25 }
  0x41   :  { %969 = vmatprep.subr.bf16.mxu0 %v1122_v28 }
  0x42   :  { %990 = vmatpush3.bf16.msra.mxu1 %v1121_v27 }
  0x43   :  { %991 = vmatprep.subr.bf16.mxu1 %v1124_v30 }
  0x44   :  { %970 = vmatpush3.bf16.msra.mxu0 %v1123_v29 }
  0x45   :  { %999 = vmatprep.subr.bf16.mxu0 %v1126_v36 }
  0x46   :  { %992 = vmatpush3.bf16.msra.mxu1 %v1125_v33 }
  0x47   :  { %504 = vmatmul.mubr.bf16.vlgmr.msra.gmra.mrb[0].mxu0 %v61_v35  ;;  %1041 = vmatprep.subr.bf16.mxu1 %v1239_v44 }
  0x48   :  { %1000 = vmatpush3.bf16.msra.mxu0 %v1127_v39  ;;  %583 = vmatprep.mubr.bf16.mxu0 %v66_v56 }
  0x49   :  { %544 = vmatmul.mubr.bf16.vlgmr.msra.gmra.mrb[0].mxu1 %v63_v41  ;;  %1001 = vmatprep.subr.bf16.mxu0 %v1128_v42  ;;  %v1158_v41 = vld [vmem:[%s1413_s5 + $0x38] sm:$0xff]   ;;  %v937_v42 = vld [vmem:[%s1412_s4] ss:$0 sm:$0xff]  ;;  %s1241_s4 = smov [#allocation7]  }
  0x4a   :  { %1043 = vmatprep.mubr.msk.bf16.mxu1 %vm1240_vm0, %v1239_v44  ;;  %1042 = vmatpush3.bf16.msra.mxu1 %v1142_v53  ;;  %s876_s5 = sshll.u32 %s1241_s4, 4  ;;  %s877_s5 = int_to_ptr.vmem [resolvable:$true] %s876_s5 }
  0x4b   :  { %1047 = vmatprep.subr.bf16.mxu1 %v1239_v44  ;;  %p1212_p3 = scmp.lt.s32.totalorder %s877_s5, %s877_s5 }
  0x4c   :  { %1002 = vmatpush3.bf16.msra.mxu0 %v1129_v43 }
  0x4d   :  { %1003 = vmatprep.subr.bf16.mxu0 %v1130_v45 }
  0x50   :  { %1004 = vmatpush3.bf16.msra.mxu0 %v1131_v46 }
  0x51   :  { %1005 = vmatprep.subr.bf16.mxu0 %v1132_v47  ;;  %1044 = vmatmul.mubr.msk.bf16.vlgmr.msra.gmra.mrb[4].mxu1 %vm467_vm1, %v67_v58 }
  0x52   :  { %1063 = vmatprep.mubr.msk.bf16.mxu1 %vm1240_vm0, %v1239_v44  ;;  %1048 = vmatpush3.bf16.msra.mxu1 %v1143_v0 }
  0x53   :  { %1049 = vmatprep.subr.bf16.mxu1 %v1239_v44 }
  0x54   :  { %1006 = vmatpush3.bf16.msra.mxu0 %v1133_v48 }
  0x55   :  { %1007 = vmatprep.subr.bf16.mxu0 %v1134_v49 }
  0x56   :  { %1050 = vmatpush3.bf16.msra.mxu1 %v1144_v1 }
  0x57   :  { %1051 = vmatprep.subr.bf16.mxu1 %v1239_v44 }
  0x58   :  { %1008 = vmatpush3.bf16.msra.mxu0 %v1135_v50 }
  0x59   :  { %1009 = vmatprep.subr.bf16.mxu0 %v1136_v51 }
  0x5a   :  { %1052 = vmatpush3.bf16.msra.mxu1 %v1145_v2 }
  0x5b   :  { %1053 = vmatprep.subr.bf16.mxu1 %v1239_v44 }
  0x5c   :  { %1010 = vmatpush3.bf16.msra.mxu0 %v1137_v52 }
  0x5d   :  { %1011 = vmatprep.subr.bf16.mxu0 %v1138_v55 }
  0x5e   :  { %1054 = vmatpush3.bf16.msra.mxu1 %v1146_v3 }
  0x5f   :  { %1055 = vmatprep.subr.bf16.mxu1 %v1239_v44 }
  0x60   :  { %1012 = vmatpush3.bf16.msra.mxu0 %v1139_v59 }
  0x61   :  { %1013 = vmatprep.subr.bf16.mxu0 %v1140_v60 }
  0x62   :  { %1056 = vmatpush3.bf16.msra.mxu1 %v1147_v4 }
  0x63   :  { %1057 = vmatprep.subr.bf16.mxu1 %v1239_v44 }
  0x64   :  { %1014 = vmatpush3.bf16.msra.mxu0 %v1141_v61 }
  0x65   :  { %1067 = vmatprep.subr.bf16.mxu0 %v1239_v44 }
  0x66   :  { %1058 = vmatpush3.bf16.msra.mxu1 %v1148_v5 }
  0x67   :  { %584 = vmatmul.mubr.bf16.vlgmr.msra.gmra.mrb[4].mxu0 %v65_v63  ;;  %1059 = vmatprep.subr.bf16.mxu1 %v1239_v44 }
  0x68   :  { %1083 = vmatprep.mubr.msk.bf16.mxu0 %vm1240_vm0, %v1239_v44  ;;  %1068 = vmatpush3.bf16.msra.mxu0 %v1151_v8 }
  0x69   :  { %1069 = vmatprep.subr.bf16.mxu0 %v1239_v44 }
  0x6a   :  { %1060 = vmatpush3.bf16.msra.mxu1 %v1149_v6 }
  0x6b   :  { %1061 = vmatprep.subr.bf16.mxu1 %v1239_v44 }
  0x6c   :  { %1070 = vmatpush3.bf16.msra.mxu0 %v1152_v9 }
  0x6d   :  { %1071 = vmatprep.subr.bf16.mxu0 %v1239_v44 }
  0x6e   :  { %1062 = vmatpush3.bf16.msra.mxu1 %v1150_v7 }
  0x70   :  { %1072 = vmatpush3.bf16.msra.mxu0 %v1153_v10 }
  0x71   :  { %1073 = vmatprep.subr.bf16.mxu0 %v1239_v44 }
  0x74   :  { %1074 = vmatpush3.bf16.msra.mxu0 %v1154_v11 }
  0x75   :  { %1075 = vmatprep.subr.bf16.mxu0 %v1239_v44 }
  0x78   :  { %1076 = vmatpush3.bf16.msra.mxu0 %v1155_v12 }
  0x79   :  { %1077 = vmatprep.subr.bf16.mxu0 %v1239_v44 }
  0x7c   :  { %1078 = vmatpush3.bf16.msra.mxu0 %v1156_v13 }
  0x7d   :  { %1079 = vmatprep.subr.bf16.mxu0 %v1239_v44 }
  0x80   :  { %1080 = vmatpush3.bf16.msra.mxu0 %v1157_v40 }
  0x81   :  { %1081 = vmatprep.subr.bf16.mxu0 %v1239_v44  ;;  %v946_v44 = vld [vmem:[%s1414_s6] ss:$0 sm:$0xff]  ;;  %s1207_s6 = scalar_lea.vmem %s877_s5, 128 }
  0x82   :  { %p1208_p2 = scmp.ne.s32.totalorder %s877_s5, %s1207_s6  ;;  %p1213_p4 = scmp.lt.s32.totalorder %s1207_s6, %s1207_s6 }
  0x84   :  { %1082 = vmatpush3.bf16.msra.mxu0 %v1158_v41  ;;  %p1214_p5 = por %p1213_p4, %p1212_p3 }
  0x86   :  { %p1215_p6 = pnand %p1214_p5, %p1208_p2 }
 0x11a   :  { %v971_v14 = vpop.f32.mrb[0].mxu0 }
 0x11b   :  { %v972_v16 = vpop.f32.mrb[1].mxu0 }
 0x11c   :  { %v973_v17 = vadd.f32 %v972_v16, %v971_v14  ;;  %v974_v18 = vpop.f32.mrb[2].mxu0  ;;  %v993_v19 = vpop.f32.mrb[0].mxu1 }
 0x11d   :  { %v975_v20 = vpop.f32.mrb[3].mxu0  ;;  %v994_v22 = vpop.f32.mrb[1].mxu1 }
 0x11e   :  { %v506_v21 = vadd.f32 %v973_v17, %v886_v15  ;;  %v995_v23 = vadd.f32 %v994_v22, %v993_v19  ;;  %v996_v24 = vpop.f32.mrb[2].mxu1 }
 0x11f   :  { %v997_v25 = vpop.f32.mrb[3].mxu1 }
 0x120   :  { %v546_v26 = vadd.f32 %v995_v23, %v506_v21 }
 0x124   :  { %v625_v27 = vpop.f32.mrb[4].mxu1 }
 0x125   :  { %v1045_v28 = vpop.f32.mrb[5].mxu1 }
 0x126   :  { %v628_v29 = vpop.f32.mrb[6].mxu1 }
 0x127   :  { %v1046_v30 = vpop.f32.mrb[7].mxu1 }
 0x13a   :  { %v1015_v31 = vpop.f32.mrb[4].mxu0 }
 0x13b   :  { %v1016_v32 = vpop.f32.mrb[5].mxu0 }
 0x13c   :  { %v1017_v33 = vadd.f32 %v1016_v32, %v1015_v31  ;;  %v1018_v34 = vpop.f32.mrb[6].mxu0 }
 0x13d   :  { %v1019_v35 = vpop.f32.mrb[7].mxu0 }
 0x13e   :  { %v586_v36 = vadd.f32 %v1017_v33, %v546_v26 }
 0x140   :  { %v626_v37 = vadd.f32 %v625_v27, %v586_v36 }
 0x142   :  { %v631_v38 = vmax.f32 %v626_v37, 0.0 }
 0x144   :  { %v632_v39 = vpack.c.bf16 %v631_v38, %v631_v38 }
 0x146   :  { %1064 = vmatmul.mubr.bf16.vlgmr.msra.gmra.mrb[8].mxu1 %v632_v39 }
 0x219   :  { %v738_v43 = vpop.f32.mrb[8].mxu1 }
 0x21a   :  { %v739_v45 = vadd.f32 %v937_v42, %v738_v43  ;;  %v1065_v46 = vpop.f32.mrb[9].mxu1 }
 0x21b   :  { %v741_v47 = vpop.f32.mrb[10].mxu1 }
 0x21c   :  { %v744_v48 = vmax.f32 %v739_v45, 0.0  ;;  %v1066_v49 = vpop.f32.mrb[11].mxu1 }
 0x21e   :  { %v745_v50 = vpack.c.bf16 %v744_v48, %v744_v48 }
 0x220   :  { %1084 = vmatmul.mubr.bf16.vlgmr.msra.gmra.mrb[8].mxu0 %v745_v50 }
 0x2f3   :  { %v851_v51 = vpop.f32.mrb[8].mxu0 }
 0x2f4   :  { %v852_v52 = vadd.f32 %v946_v44, %v851_v51  ;;  %v1085_v53 = vpop.f32.mrb[9].mxu0 }
 0x2f5   :  { %v854_v54 = vpop.f32.mrb[10].mxu0 }
 0x2f6   :  { %v1086_v55 = vpop.f32.mrb[11].mxu0  ;;  %v858_v56 = vsel %vm857_vm2, %v852_v52, -inf }
 0x2f7   :  { %859 = vmax.xlane.f32.xlu0 %v858_v56 }
 0x384   :  { %v860_v57 = vpop.xlane.xlu0 %859 }
 0x385   :  { %v861_v58 = vsub.f32 %v852_v52, %v860_v57 }
 0x387   :  { %v862_v59 = vmul.f32 1.442695, %v861_v58 }
 0x389   :  { %1159 = vpow2.f32 %v862_v59 }
 0x393   :  { %v1160_v60 = vpop.eup %1159 }
 0x394   :  { %v864_v61 = vsel %vm857_vm2, %v1160_v60, 0.0 }
 0x395   :  { %865 = vadd.xlane.f32.xlu0 %v864_v61 }
 0x422   :  { %v866_v62 = vpop.xlane.xlu0 %865 }
 0x423   :  { %1161 = vrcp.f32 %v866_v62 }
 0x42d   :  { %v1162_v63 = vpop.eup %1161 }
 0x42e   :  { %v868_v0 = vmul.f32 %v1162_v63, %v1160_v60 }
 0x430   :  { %869 = vst.msk [vmem:[#allocation7] sm:$0xff] %vm857_vm2, %v868_v0 }
 0x431   :  { %1218 = shalt.err (!%p1215_p6)
}
 0x432   :  { %s1219_s15 = scalar_lea.hbm %s1415_s7, 128 }
 0x433   :  { %p1220_p7 = scmp.ne.s32.totalorder %s1415_s7, %s1219_s15  ;;  %p1223_p8 = scmp.lt.u32.totalorder %s1219_s15, %s1415_s7 }
 0x435   :  { %p1225_p9 = pnand %p1223_p8, %p1220_p7 }
 0x437   :  { %1228 = shalt.err (!%p1225_p9)
}
 0x438   :  { %879 = dma.vmem_to_hbm [thread:$0]  %s877_s5, 128, %s1415_s7, [#allocation4]  }
 0x439   :  { %1233 = dma.done.wait [#allocation4], 128  }
 0x43a   :  { %1234 = vsyncadd [#allocation4], 4294967168 }
 0x43b   :  { %883 = vsyncpa [#allocation3], 1 }
 0x43c   :  { %884 = vsyncpa [#allocation6], 1 }
 0x43d   :  { %885 = vsyncpa [#allocation4], 1 }

</bundles_post_ra>
